<compile_context>
chip_gen: v7x
topology: tpu7x:2x2x1
jax: 0.10.0
libtpu: 0.0.40
codegen_flags: <defaults>
</compile_context>

<pallas_src>
import jax
import jax.numpy as jnp
from jax.experimental import pallas as pl
from jax.experimental.pallas import tpu as pltpu

_LANE = 128
_PAD_LOGIT = -30000.0                    # exp(-|pad|)==0 exactly -> zero BCE / sigmoid term
_TILE_BUDGET_BYTES = 24 * 1024 * 1024    # all input streams, double-buffered (v7x-safe)
_N_BLOCK_MAX = 128                       # bounds VMEM w.r.t. batch size


def _round_up(a, b):
    return ((a + b - 1) // b) * b


def _sublane_align(dtype):
    # min second-minor block multiple for the packed layout of this dtype
    return {4: 8, 2: 16, 1: 32}.get(jnp.dtype(dtype).itemsize, 8)


def _make_kernel(*, has_weight, needs_row_mask, rows, tile_rows, steps_per_par):
    def kernel(*refs):
        if has_weight:
            x_ref, t_ref, w_ref, out_ref = refs
        else:
            x_ref, t_ref, out_ref = refs

        s = pl.program_id(2)

        @pl.when(s == 0)
        def _init():
            out_ref[...] = jnp.zeros_like(out_ref)

        x = x_ref[...].astype(jnp.float32)          # (n_blk, tile_rows, 128)
        t = t_ref[...].astype(jnp.float32)
        w = w_ref[...].astype(jnp.float32) if has_weight else None

        if needs_row_mask:
            # Partial / duplicated last row-tile: zero its contribution in-kernel
            # (no host-side padding of the row axis).
            row0 = (pl.program_id(0) * steps_per_par + s) * tile_rows
            ridx = row0 + jax.lax.broadcasted_iota(jnp.int32, x.shape, 1)
            valid = ridx < rows
            x = jnp.where(valid, x, _PAD_LOGIT)
            t = jnp.where(valid, t, 0.0)
            if has_weight:
                w = jnp.where(valid, w, 0.0)

        # One shared transcendental: e = exp(-|x|) feeds both the stable BCE log
        # term and the stable sigmoid.
        e = jnp.exp(-jnp.abs(x))
        one_pe = 1.0 + e
        bce = jnp.maximum(x, 0.0) - x * t + jnp.log1p(e)
        # EUP approx reciprocal + one Newton step (~f32 exact) instead of a VPU divide.
        r = pl.reciprocal(one_pe, approx=True)
        inv_1pe = r * (2.0 - one_pe * r)
        # e*inv costs the same as 1-inv but is exact for padded lanes and accurate
        # for very negative logits.
        sig = jnp.where(x >= 0.0, inv_1pe, e * inv_1pe)

        if has_weight:
            bce = bce * w
            preds = sig * w
            trues = t * w
        else:
            preds = sig
            trues = t

        # Per-sample partial sums; only the row (sublane) axis is reduced here,
        # the lane dim is kept so the resident output block stays lane-dense.
        # (For n_blk < 8 these 4 adds are masked partial-vreg stores - negligible,
        #  once per grid step.)
        out_ref[0, 0] += jnp.sum(bce, axis=1)
        out_ref[0, 1] += jnp.sum(preds * trues, axis=1)
        out_ref[0, 2] += jnp.sum(preds, axis=1)
        out_ref[0, 3] += jnp.sum(trues, axis=1)

    return kernel


def bce_dice_loss(input_arr, target_arr, weight=None, *,
                  tile_budget_bytes=_TILE_BUDGET_BYTES,
                  n_block_max=_N_BLOCK_MAX,
                  num_row_splits=2):
    """BCEDiceLoss.forward (size_average=True) via a streaming Pallas kernel.

    input_arr, target_arr: (N, ...) arrays (e.g. NCHW logits / targets), any
    float dtype (kept native through the DMA, upcast to f32 in-kernel).
    weight: optional, broadcastable to input_arr.shape (applied in both BCE and
    dice, matching the PyTorch module).
    """
    assert input_arr.shape == target_arr.shape
    n = input_arr.shape[0]
    d = input_arr.size // n

    x = input_arr.reshape(n, d)
    t = target_arr.reshape(n, d)
    has_weight = weight is not None
    streams = [x, t]
    if has_weight:
        w = jnp.asarray(weight)
        if w.size != input_arr.size:
            # TODO(synk): small (e.g. per-channel) weights could be passed
            # unexpanded (SMEM / small VMEM block) and broadcast in-kernel to
            # avoid materializing an N x D array in HBM.
            w = jnp.broadcast_to(w, input_arr.shape)
        streams.append(w.reshape(n, d))

    # ---- layout: feature axis -> (rows, 128) lanes, batch-major ----
    rows = pl.cdiv(d, _LANE)
    pad_cols = rows * _LANE - d
    if pad_cols:
        # Ragged D: pad only the final (<128 col) lane row with values whose BCE
        # and sigmoid contributions are exactly zero.
        # TODO(synk): this still costs one pad copy per stream; a fully pad-free
        # path needs a non-reshaped 2-D layout with in-kernel lane masking.
        pads = [_PAD_LOGIT, 0.0, 0.0]
        streams = [jnp.pad(a, ((0, 0), (0, pad_cols)), constant_values=p)
                   for a, p in zip(streams, pads)]
    streams = [a.reshape(n, rows, _LANE) for a in streams]

    # ---- tile geometry (dtype-aware, byte-budgeted, balanced) ----
    align = max(_sublane_align(a.dtype) for a in streams)
    n_blk = min(n, n_block_max)
    nb_total = pl.cdiv(n, n_blk)
    # bytes of one row of the tile across all streams, double-buffered
    row_bytes = 2 * n_blk * _LANE * sum(a.dtype.itemsize for a in streams)
    budget_rows = max(align, (tile_budget_bytes // row_bytes) // align * align)

    base_tiles = pl.cdiv(rows, budget_rows)
    # Split the row range across TensorCores only when there is enough work
    # that the (<= align rows) coverage overshoot is negligible.
    par = num_row_splits if (num_row_splits > 1 and base_tiles >= num_row_splits) else 1
    num_tiles = _round_up(max(base_tiles, par), par)
    if num_tiles == 1:
        tile_rows = rows                      # full dim -> no alignment constraint
    else:
        tile_rows = _round_up(pl.cdiv(rows, num_tiles), align)
    steps_per_par = num_tiles // par
    max_row_block = pl.cdiv(rows, tile_rows) - 1     # last (possibly partial) block
    needs_row_mask = (num_tiles * tile_rows != rows)

    block = (n_blk, tile_rows, _LANE)

    def in_map(p, b, s):
        # Clamp so logical tiles past the end re-read the last real block; the
        # in-kernel row mask zeroes their contribution.
        return (b, jnp.minimum(p * steps_per_par + s, max_row_block), 0)

    in_specs = [pl.BlockSpec(block, in_map) for _ in streams]
    out_specs = pl.BlockSpec((1, 4, n_blk, _LANE),
                             lambda p, b, s: (p * nb_total + b, 0, 0, 0))

    kernel = _make_kernel(has_weight=has_weight, needs_row_mask=needs_row_mask,
                          rows=rows, tile_rows=tile_rows,
                          steps_per_par=steps_per_par)

    elems = n * rows * _LANE
    cost = pl.CostEstimate(
        flops=18 * elems,
        transcendentals=3 * elems,
        bytes_accessed=int(sum(a.size * a.dtype.itemsize for a in streams))
        + par * nb_total * 4 * n_blk * _LANE * 4,
    )

    partials = pl.pallas_call(
        kernel,
        out_shape=jax.ShapeDtypeStruct((par * nb_total, 4, n_blk, _LANE), jnp.float32),
        grid_spec=pltpu.PrefetchScalarGridSpec(
            num_scalar_prefetch=0,
            grid=(par, nb_total, steps_per_par),
            in_specs=in_specs,
            out_specs=out_specs,
        ),
        compiler_params=pltpu.CompilerParams(
            dimension_semantics=("parallel", "parallel", "arbitrary"),
            vmem_limit_bytes=32 * 1024 * 1024,
        ),
        cost_estimate=cost,
    )(*streams)

    # ---- tiny host-side combine (O(n*4*128) elements) ----
    parts = partials.reshape(par, nb_total, 4, n_blk, _LANE).sum(axis=0)
    parts = jnp.moveaxis(parts, 2, 1).reshape(nb_total * n_blk, 4, _LANE)[:n]
    sums = parts.sum(axis=-1)                                  # (n, 4)
    bce = jnp.sum(sums[:, 0]) / (n * d)                        # mean over ORIGINAL count
    inter, psum, tsum = sums[:, 1], sums[:, 2], sums[:, 3]
    scores = 2.0 * (inter + 1.0) / (psum + tsum + 1.0)
    dice = jnp.clip(jnp.sum(scores) / n, 0.0, 1.0)
    return bce + (1.0 - dice)


def _reference(input_arr, target_arr, weight=None):
    # Pure-JAX reference mirroring the PyTorch module.
    n = input_arr.shape[0]
    x = input_arr.reshape(n, -1).astype(jnp.float32)
    t = target_arr.reshape(n, -1).astype(jnp.float32)
    if weight is None:
        w = jnp.ones_like(x)
    else:
        w = jnp.broadcast_to(jnp.asarray(weight, jnp.float32),
                             input_arr.shape).reshape(n, -1)
    bce = jnp.mean(w * (jnp.maximum(x, 0.0) - x * t + jnp.log1p(jnp.exp(-jnp.abs(x)))))
    p = jax.nn.sigmoid(x) * w
    tr = t * w
    inter = jnp.sum(p * tr, axis=1)
    scores = 2.0 * (inter + 1.0) / (jnp.sum(p, axis=1) + jnp.sum(tr, axis=1) + 1.0)
    dice = jnp.clip(jnp.sum(scores) / n, 0.0, 1.0)
    return bce + (1.0 - dice)


if __name__ == "__main__":
    key = jax.random.PRNGKey(0)
    k1, k2, k3, k4, k5, k6, k7 = jax.random.split(key, 7)

    # Primary case: (N, C, H, W) = (2, 4, 16, 16), no weight.
    N, C, H, W = 2, 4, 16, 16
    logits = jax.random.normal(k1, (N, C, H, W), dtype=jnp.float32)
    target = (jax.random.uniform(k2, (N, C, H, W)) > 0.5).astype(jnp.float32)
    loss = jax.block_until_ready(bce_dice_loss(logits, target))
    ref = jax.block_until_ready(_reference(logits, target))
    assert jnp.allclose(loss, ref, rtol=1e-5, atol=5e-5), (loss, ref)

    # Weighted path (full-shape per-element weight).
    weight = jax.random.uniform(k3, (N, C, H, W), dtype=jnp.float32) + 0.5
    loss_w = jax.block_until_ready(bce_dice_loss(logits, target, weight=weight))
    ref_w = jax.block_until_ready(_reference(logits, target, weight=weight))
    assert jnp.allclose(loss_w, ref_w, rtol=1e-5, atol=5e-5), (loss_w, ref_w)

    # Ragged feature size (exercises the <128-col lane pad) + bf16 kept native.
    logits2 = jax.random.normal(k4, (2, 3, 7, 9), dtype=jnp.float32).astype(jnp.bfloat16)
    target2 = (jax.random.uniform(k5, (2, 3, 7, 9)) > 0.5).astype(jnp.bfloat16)
    loss2 = jax.block_until_ready(bce_dice_loss(logits2, target2))
    ref2 = jax.block_until_ready(_reference(logits2, target2))
    assert jnp.allclose(loss2, ref2, rtol=1e-4, atol=1e-4), (loss2, ref2)

    # Multi-tile streaming path: a small tile budget forces several row tiles,
    # the 2-way parallel row split and the in-kernel partial-tile row mask.
    logits3 = jax.random.normal(k6, (2, 4, 25, 128), dtype=jnp.float32)
    target3 = (jax.random.uniform(k7, (2, 4, 25, 128)) > 0.5).astype(jnp.float32)
    loss3 = jax.block_until_ready(
        bce_dice_loss(logits3, target3, tile_budget_bytes=100_000))
    ref3 = jax.block_until_ready(_reference(logits3, target3))
    assert jnp.allclose(loss3, ref3, rtol=1e-5, atol=5e-5), (loss3, ref3)

    print("KERNEL_OK")
</pallas_src>

<mosaic_0001>
module attributes {stable_mosaic.version = 11 : i64} {
  func.func @kernel(%arg0: i32, %arg1: i32, %arg2: i32, %arg3: memref<2x8x128xf32, #tpu.memory_space<vmem>>, %arg4: memref<2x8x128xf32, #tpu.memory_space<vmem>>, %arg5: memref<1x4x2x128xf32, #tpu.memory_space<vmem>>) attributes {dimension_semantics = [#tpu.dimension_semantics<parallel>, #tpu.dimension_semantics<parallel>, #tpu.dimension_semantics<arbitrary>], iteration_bounds = array<i64: 1, 1, 1>, scalar_prefetch = 0 : i64, scratch_operands = 0 : i64, tpu.core_type = #tpu.core_type<tc>, window_params = [{transform_indices = @transform_0, window_bounds = array<i64: 2, 8, 128>}, {transform_indices = @transform_1, window_bounds = array<i64: 2, 8, 128>}, {transform_indices = @transform_2, window_bounds = array<i64: 1, 4, 2, 128>}]} {
    %c0_i32 = arith.constant 0 : i32
    %0 = arith.cmpi eq, %arg2, %c0_i32 : i32
    %1 = arith.extui %0 : i1 to i32
    %c0_i32_0 = arith.constant 0 : i32
    %2 = arith.cmpi ne, %1, %c0_i32_0 : i32
    scf.if %2 {
      %cst_43 = arith.constant 0.000000e+00 : f32
      %55 = vector.broadcast %cst_43 : f32 to vector<1x4x2x128xf32>
      %c0_44 = arith.constant 0 : index
      %c0_45 = arith.constant 0 : index
      %c0_46 = arith.constant 0 : index
      %c0_47 = arith.constant 0 : index
      %56 = vector.load %arg5[%c0_44, %c0_45, %c0_46, %c0_47] : memref<1x4x2x128xf32, #tpu.memory_space<vmem>>, vector<1x4x2x128xf32>
      tpu.vector_store %arg5[%c0_44, %c0_45, %c0_46, %c0_47], %55 {strides = array<i32>} : memref<1x4x2x128xf32, #tpu.memory_space<vmem>>, vector<1x4x2x128xf32>,
    } else {
    }
    %c0 = arith.constant 0 : index
    %c0_1 = arith.constant 0 : index
    %c0_2 = arith.constant 0 : index
    %3 = vector.load %arg3[%c0, %c0_1, %c0_2] : memref<2x8x128xf32, #tpu.memory_space<vmem>>, vector<2x8x128xf32>
    %c0_3 = arith.constant 0 : index
    %c0_4 = arith.constant 0 : index
    %c0_5 = arith.constant 0 : index
    %4 = vector.load %arg4[%c0_3, %c0_4, %c0_5] : memref<2x8x128xf32, #tpu.memory_space<vmem>>, vector<2x8x128xf32>
    %5 = math.absf %3 : vector<2x8x128xf32>
    %cst = arith.constant 0.000000e+00 : f32
    %6 = vector.broadcast %cst : f32 to vector<2x8x128xf32>
    %7 = arith.subf %6, %5 : vector<2x8x128xf32>
    %8 = math.exp %7 : vector<2x8x128xf32>
    %cst_6 = arith.constant 1.000000e+00 : f32
    %9 = vector.broadcast %cst_6 : f32 to vector<2x8x128xf32>
    %10 = arith.addf %9, %8 : vector<2x8x128xf32>
    %cst_7 = arith.constant 0.000000e+00 : f32
    %11 = vector.broadcast %cst_7 : f32 to vector<2x8x128xf32>
    %12 = arith.maximumf %3, %11 : vector<2x8x128xf32>
    %13 = arith.mulf %3, %4 : vector<2x8x128xf32>
    %14 = arith.subf %12, %13 : vector<2x8x128xf32>
    %15 = math.log1p %8 : vector<2x8x128xf32>
    %16 = arith.addf %14, %15 : vector<2x8x128xf32>
    %17 = tpu.reciprocal %10 {approx = true} : vector<2x8x128xf32> -> vector<2x8x128xf32>
    %18 = arith.mulf %10, %17 : vector<2x8x128xf32>
    %cst_8 = arith.constant 2.000000e+00 : f32
    %19 = vector.broadcast %cst_8 : f32 to vector<2x8x128xf32>
    %20 = arith.subf %19, %18 : vector<2x8x128xf32>
    %21 = arith.mulf %17, %20 : vector<2x8x128xf32>
    %cst_9 = arith.constant 0.000000e+00 : f32
    %22 = vector.broadcast %cst_9 : f32 to vector<2x8x128xf32>
    %23 = arith.cmpf oge, %3, %22 : vector<2x8x128xf32>
    %24 = arith.mulf %8, %21 : vector<2x8x128xf32>
    %25 = arith.select %23, %21, %24 : vector<2x8x128xi1>, vector<2x8x128xf32>
    %c0_10 = arith.constant 0 : index
    %c0_11 = arith.constant 0 : index
    %c0_12 = arith.constant 0 : index
    %c0_13 = arith.constant 0 : index
    %26 = vector.load %arg5[%c0_10, %c0_11, %c0_12, %c0_13] : memref<1x4x2x128xf32, #tpu.memory_space<vmem>>, vector<1x1x2x128xf32>
    %27 = vector.shape_cast %26 : vector<1x1x2x128xf32> to vector<2x128xf32>
    %cst_14 = arith.constant dense<0.000000e+00> : vector<2x128xf32>
    %28 = vector.multi_reduction <add>, %16, %cst_14 [1] : vector<2x8x128xf32> to vector<2x128xf32>
    %29 = arith.addf %27, %28 : vector<2x128xf32>
    %c0_15 = arith.constant 0 : index
    %c0_16 = arith.constant 0 : index
    %c0_17 = arith.constant 0 : index
    %c0_18 = arith.constant 0 : index
    %30 = vector.load %arg5[%c0_15, %c0_16, %c0_17, %c0_18] : memref<1x4x2x128xf32, #tpu.memory_space<vmem>>, vector<1x1x2x128xf32>
    %31 = vector.shape_cast %30 : vector<1x1x2x128xf32> to vector<2x128xf32>
    %32 = vector.shape_cast %29 : vector<2x128xf32> to vector<1x1x2x128xf32>
    tpu.vector_store %arg5[%c0_15, %c0_16, %c0_17, %c0_18], %32 {strides = array<i32>} : memref<1x4x2x128xf32, #tpu.memory_space<vmem>>, vector<1x1x2x128xf32>,
    %c0_19 = arith.constant 0 : index
    %c1 = arith.constant 1 : index
    %c0_20 = arith.constant 0 : index
    %c0_21 = arith.constant 0 : index
    %33 = vector.load %arg5[%c0_19, %c1, %c0_20, %c0_21] : memref<1x4x2x128xf32, #tpu.memory_space<vmem>>, vector<1x1x2x128xf32>
    %34 = vector.shape_cast %33 : vector<1x1x2x128xf32> to vector<2x128xf32>
    %35 = arith.mulf %25, %4 : vector<2x8x128xf32>
    %cst_22 = arith.constant dense<0.000000e+00> : vector<2x128xf32>
    %36 = vector.multi_reduction <add>, %35, %cst_22 [1] : vector<2x8x128xf32> to vector<2x128xf32>
    %37 = arith.addf %34, %36 : vector<2x128xf32>
    %c0_23 = arith.constant 0 : index
    %c1_24 = arith.constant 1 : index
    %c0_25 = arith.constant 0 : index
    %c0_26 = arith.constant 0 : index
    %38 = vector.load %arg5[%c0_23, %c1_24, %c0_25, %c0_26] : memref<1x4x2x128xf32, #tpu.memory_space<vmem>>, vector<1x1x2x128xf32>
    %39 = vector.shape_cast %38 : vector<1x1x2x128xf32> to vector<2x128xf32>
    %40 = vector.shape_cast %37 : vector<2x128xf32> to vector<1x1x2x128xf32>
    tpu.vector_store %arg5[%c0_23, %c1_24, %c0_25, %c0_26], %40 {strides = array<i32>} : memref<1x4x2x128xf32, #tpu.memory_space<vmem>>, vector<1x1x2x128xf32>,
    %c0_27 = arith.constant 0 : index
    %c2 = arith.constant 2 : index
    %c0_28 = arith.constant 0 : index
    %c0_29 = arith.constant 0 : index
    %41 = vector.load %arg5[%c0_27, %c2, %c0_28, %c0_29] : memref<1x4x2x128xf32, #tpu.memory_space<vmem>>, vector<1x1x2x128xf32>
    %42 = vector.shape_cast %41 : vector<1x1x2x128xf32> to vector<2x128xf32>
    %cst_30 = arith.constant dense<0.000000e+00> : vector<2x128xf32>
    %43 = vector.multi_reduction <add>, %25, %cst_30 [1] : vector<2x8x128xf32> to vector<2x128xf32>
    %44 = arith.addf %42, %43 : vector<2x128xf32>
    %c0_31 = arith.constant 0 : index
    %c2_32 = arith.constant 2 : index
    %c0_33 = arith.constant 0 : index
    %c0_34 = arith.constant 0 : index
    %45 = vector.load %arg5[%c0_31, %c2_32, %c0_33, %c0_34] : memref<1x4x2x128xf32, #tpu.memory_space<vmem>>, vector<1x1x2x128xf32>
    %46 = vector.shape_cast %45 : vector<1x1x2x128xf32> to vector<2x128xf32>
    %47 = vector.shape_cast %44 : vector<2x128xf32> to vector<1x1x2x128xf32>
    tpu.vector_store %arg5[%c0_31, %c2_32, %c0_33, %c0_34], %47 {strides = array<i32>} : memref<1x4x2x128xf32, #tpu.memory_space<vmem>>, vector<1x1x2x128xf32>,
    %c0_35 = arith.constant 0 : index
    %c3 = arith.constant 3 : index
    %c0_36 = arith.constant 0 : index
    %c0_37 = arith.constant 0 : index
    %48 = vector.load %arg5[%c0_35, %c3, %c0_36, %c0_37] : memref<1x4x2x128xf32, #tpu.memory_space<vmem>>, vector<1x1x2x128xf32>
    %49 = vector.shape_cast %48 : vector<1x1x2x128xf32> to vector<2x128xf32>
    %cst_38 = arith.constant dense<0.000000e+00> : vector<2x128xf32>
    %50 = vector.multi_reduction <add>, %4, %cst_38 [1] : vector<2x8x128xf32> to vector<2x128xf32>
    %51 = arith.addf %49, %50 : vector<2x128xf32>
    %c0_39 = arith.constant 0 : index
    %c3_40 = arith.constant 3 : index
    %c0_41 = arith.constant 0 : index
    %c0_42 = arith.constant 0 : index
    %52 = vector.load %arg5[%c0_39, %c3_40, %c0_41, %c0_42] : memref<1x4x2x128xf32, #tpu.memory_space<vmem>>, vector<1x1x2x128xf32>
    %53 = vector.shape_cast %52 : vector<1x1x2x128xf32> to vector<2x128xf32>
    %54 = vector.shape_cast %51 : vector<2x128xf32> to vector<1x1x2x128xf32>
    tpu.vector_store %arg5[%c0_39, %c3_40, %c0_41, %c0_42], %54 {strides = array<i32>} : memref<1x4x2x128xf32, #tpu.memory_space<vmem>>, vector<1x1x2x128xf32>,
    return
  }
  func.func @transform_0(%arg0: i32, %arg1: i32, %arg2: i32) -> (i32, i32, i32) {
    %c1_i32 = arith.constant 1 : i32
    %0 = arith.muli %arg0, %c1_i32 : i32
    %1 = arith.addi %0, %arg2 : i32
    %c0_i32 = arith.constant 0 : i32
    %2 = arith.minsi %1, %c0_i32 : i32
    %c0_i32_0 = arith.constant 0 : i32
    %c0_i32_1 = arith.constant 0 : i32
    return %arg1, %2, %c0_i32_0 : i32, i32, i32
  }
  func.func @transform_1(%arg0: i32, %arg1: i32, %arg2: i32) -> (i32, i32, i32) {
    %c1_i32 = arith.constant 1 : i32
    %0 = arith.muli %arg0, %c1_i32 : i32
    %1 = arith.addi %0, %arg2 : i32
    %c0_i32 = arith.constant 0 : i32
    %2 = arith.minsi %1, %c0_i32 : i32
    %c0_i32_0 = arith.constant 0 : i32
    %c0_i32_1 = arith.constant 0 : i32
    return %arg1, %2, %c0_i32_0 : i32, i32, i32
  }
  func.func @transform_2(%arg0: i32, %arg1: i32, %arg2: i32) -> (i32, i32, i32, i32) {
    %c1_i32 = arith.constant 1 : i32
    %0 = arith.muli %arg0, %c1_i32 : i32
    %1 = arith.addi %0, %arg1 : i32
    %c0_i32 = arith.constant 0 : i32
    %c0_i32_0 = arith.constant 0 : i32
    %c0_i32_1 = arith.constant 0 : i32
    %c0_i32_2 = arith.constant 0 : i32
    return %1, %c0_i32, %c0_i32_0, %c0_i32_1 : i32, i32, i32, i32
  }
}

</mosaic_0001>

<bundles_post_ra>
// kernel: tpu_custom_call.1
= control target key start
LH: loop header
LB: loop body
LE: loop exit
PB: predicated region body
PF: predicated region fallthrough
CT: control target
= control target key end

     0   :  { %7 = vsyncpa [#allocation3], 0  ;;  %s406_s0 = inlined_call_operand.hbm [shape: f32[2,8,128], index: 0, kind: input, shape index: {}]   ;;  %s407_s1 = inlined_call_operand.hbm [shape: f32[2,8,128], index: 1, kind: input, shape index: {}]   ;;  %s408_s2 = inlined_call_operand.hbm [shape: f32[1,4,2,128], index: 2, kind: output, shape index: {}]  }
   0x1   :  { %8 = vsyncpa [#allocation6], 0 }
   0x2   :  { %9 = vsyncpa [#allocation4], 0  ;;  %s319_s9 = smov [#allocation2]   ;;  %s247_s13 = scalar_lea.hbm %s406_s0, 256 }
   0x3   :  { %s20_s10 = sshll.u32 %s319_s9, 4  ;;  %p248_p0 = scmp.ne.s32.totalorder %s406_s0, %s247_s13  ;;  %s21_s10 = int_to_ptr.vmem [resolvable:$true] %s20_s10 }
   0x4   :  { %p251_p1 = scmp.lt.u32.totalorder %s247_s13, %s406_s0 }
   0x6   :  { %p253_p2 = pnand %p251_p1, %p248_p0 }
   0x8   :  { %256 = shalt.err (!%p253_p2)
}
   0x9   :  { %s257_s18 = scalar_lea.vmem %s21_s10, 256  ;;  %p262_p4 = scmp.lt.s32.totalorder %s21_s10, %s21_s10 }
   0xa   :  { %p258_p3 = scmp.ne.s32.totalorder %s21_s10, %s257_s18  ;;  %p263_p5 = scmp.lt.s32.totalorder %s257_s18, %s257_s18 }
   0xc   :  { %p264_p6 = por %p263_p5, %p262_p4 }
   0xe   :  { %p265_p7 = pnand %p264_p6, %p258_p3 }
  0x10   :  { %268 = shalt.err (!%p265_p7)
}
  0x11   :  { %s320_s19 = smov 128   ;;  %s321_s20 = smov 8  }
  0x12   :  { %26 = dma.hbm_to_vmem [thread:$0]  %s406_s0, 256, %s21_s10, [#allocation3], %s320_s19, %s320_s19, %s321_s20  }
  0x13   :  { %s322_s23 = smov [#allocation5]   ;;  %s269_s27 = scalar_lea.hbm %s407_s1, 256 }
  0x14   :  { %s37_s24 = sshll.u32 %s322_s23, 4  ;;  %p270_p8 = scmp.ne.s32.totalorder %s407_s1, %s269_s27  ;;  %s38_s24 = int_to_ptr.vmem [resolvable:$true] %s37_s24 }
  0x15   :  { %p273_p9 = scmp.lt.u32.totalorder %s269_s27, %s407_s1 }
  0x17   :  { %p275_p10 = pnand %p273_p9, %p270_p8 }
  0x19   :  { %278 = shalt.err (!%p275_p10)
}
  0x1a   :  { %s279_s4 = scalar_lea.vmem %s38_s24, 256  ;;  %p284_p12 = scmp.lt.s32.totalorder %s38_s24, %s38_s24 }
  0x1b   :  { %p280_p11 = scmp.ne.s32.totalorder %s38_s24, %s279_s4  ;;  %p285_p13 = scmp.lt.s32.totalorder %s279_s4, %s279_s4 }
  0x1d   :  { %p286_p0 = por %p285_p13, %p284_p12 }
  0x1f   :  { %p287_p1 = pnand %p286_p0, %p280_p11 }
  0x21   :  { %290 = shalt.err (!%p287_p1)
}
  0x22   :  { %43 = dma.hbm_to_vmem [thread:$0]  %s407_s1, 256, %s38_s24, [#allocation6], %s320_s19, %s320_s19, %s321_s20  }
  0x23   :  { %313 = dma.done.wait [#allocation3], 256  }
  0x24   :  { %314 = vsyncadd [#allocation3], 4294967040 }
  0x25   :  { %315 = dma.done.wait [#allocation6], 256  }
  0x26   :  { %316 = vsyncadd [#allocation6], 4294967040  ;;  %v323_v0 = vmov 0.0   ;;  %v366_v1 = vld [vmem:[#allocation2] sm:$0xff]  ;;  %v368_v2 = vld [vmem:[#allocation2 + $0x8] sm:$0xff]  ;;  %vm134_vm0 = vcmask 1041409  }
  0x27   :  { %61 = vst [vmem:[#allocation7] sm:$0x3] %v323_v0  ;;  %62 = vst [vmem:[#allocation7 + $0x2] sm:$0x3] %v323_v0  ;;  %v69_v3 = vand.u32 2147483647, %v366_v1 }
  0x28   :  { %63 = vst [vmem:[#allocation7 + $0x4] sm:$0x3] %v323_v0  ;;  %64 = vst [vmem:[#allocation7 + $0x6] sm:$0x3] %v323_v0  ;;  %v70_v4 = vand.u32 2147483647, %v368_v2 }
  0x29   :  { %v372_v5 = vld [vmem:[#allocation5] sm:$0xff]  ;;  %v374_v6 = vld [vmem:[#allocation5 + $0x8] sm:$0xff]  ;;  %v71_v7 = vsub.f32 0.0, %v69_v3  ;;  %v79_v33 = vmax.f32 %v366_v1, 0.0  ;;  %v80_v37 = vmax.f32 %v368_v2, 0.0  ;;  %vm113_vm3 = vcmp.ge.f32.partialorder %v366_v1, 0.0 }
  0x2a   :  { %v72_v8 = vsub.f32 0.0, %v70_v4  ;;  %v183_v9 = vrot.slane %v372_v5, 4  ;;  %v189_v10 = vrot.slane %v374_v6, 4  ;;  %v81_v34 = vmul.f32 %v372_v5, %v366_v1  ;;  %s324_s1 = smov [#allocation7]  }
  0x2b   :  { %v73_v11 = vmul.f32 1.442695, %v71_v7  ;;  %v82_v38 = vmul.f32 %v374_v6, %v368_v2  ;;  %vm114_vm4 = vcmp.ge.f32.partialorder %v368_v2, 0.0  ;;  %s210_s6 = sshll.u32 %s324_s1, 4  ;;  %s211_s6 = int_to_ptr.vmem [resolvable:$true] %s210_s6 }
  0x2c   :  { %v75_v12 = vmul.f32 1.442695, %v72_v8  ;;  %v184_v13 = vadd.f32 %v183_v9, %v372_v5  ;;  %v190_v14 = vadd.f32 %v189_v10, %v374_v6  ;;  %v83_v42 = vsub.f32 %v79_v33, %v81_v34  ;;  %s291_s7 = scalar_lea.vmem %s211_s6, 128  ;;  %p296_p3 = scmp.lt.s32.totalorder %s211_s6, %s211_s6 }
  0x2d   :  { %235 = vpow2.f32 %v73_v11  ;;  %v84_v45 = vsub.f32 %v80_v37, %v82_v38  ;;  %p292_p2 = scmp.ne.s32.totalorder %s211_s6, %s291_s7  ;;  %p297_p4 = scmp.lt.s32.totalorder %s291_s7, %s291_s7 }
  0x2e   :  { %237 = vpow2.f32 %v75_v12  ;;  %v185_v15 = vrot.slane %v184_v13, 2  ;;  %v191_v16 = vrot.slane %v190_v14, 2 }
  0x2f   :  { %v182_v21 = vld [vmem:[#allocation7 + $0x6] sm:$0x3]  ;;  %v162_v38 = vld [vmem:[#allocation7 + $0x4] sm:$0x3]  ;;  %p298_p5 = por %p297_p4, %p296_p3 }
  0x30   :  { %v186_v17 = vadd.f32 %v185_v15, %v184_v13  ;;  %v192_v18 = vadd.f32 %v191_v16, %v190_v14 }
  0x31   :  { %p299_p6 = pnand %p298_p5, %p292_p2 }
  0x32   :  { %v187_v19 = vrot.slane %v186_v17, 1  ;;  %v193_v20 = vrot.slane %v192_v18, 1 }
  0x34   :  { %v188_v22 = vadd.f32 %v187_v19, %v186_v17  ;;  %v194_v23 = vadd.f32 %v193_v20, %v192_v18 }
  0x36   :  { %v197_v24 = vsel %vm134_vm0, %v194_v23, %v188_v22  ;;  %v119_v23 = vld [vmem:[#allocation7] sm:$0x3] }
  0x37   :  { %v236_v25 = vpop.eup %235  ;;  %v199_v26 = vadd.f32 %v197_v24, %v182_v21 }
  0x38   :  { %v238_v27 = vpop.eup %237  ;;  %v77_v28 = vadd.f32 1.0, %v236_v25  ;;  %v88_v30 = vmul.f32 -0.5, %v236_v25  ;;  %v91_v35 = vand.u32 2147483647, %v236_v25 }
  0x39   :  { %v78_v29 = vadd.f32 1.0, %v238_v27  ;;  %200 = vst [vmem:[#allocation7 + $0x6] sm:$0x3] %v199_v26  ;;  %v97_v31 = vmul.f32 -0.5, %v238_v27  ;;  %v100_v39 = vand.u32 2147483647, %v238_v27 }
  0x3a   :  { %239 = vlog2.f32 %v77_v28  ;;  %v89_v32 = vadd.f32 1.0, %v88_v30  ;;  %vm92_vm1 = vcmp.lt.f32.partialorder %v91_v35, 0.0004427343 }
  0x3b   :  { %241 = vlog2.f32 %v78_v29  ;;  %v98_v36 = vadd.f32 1.0, %v97_v31  ;;  %vm101_vm2 = vcmp.lt.f32.partialorder %v100_v39, 0.0004427343 }
  0x3c   :  { %243 = vrcp.f32 %v77_v28  ;;  %v90_v40 = vmul.f32 %v236_v25, %v89_v32 }
  0x3d   :  { %245 = vrcp.f32 %v78_v29  ;;  %v99_v43 = vmul.f32 %v238_v27, %v98_v36 }
  0x44   :  { %v240_v41 = vpop.eup %239 }
  0x45   :  { %v242_v44 = vpop.eup %241  ;;  %v87_v46 = vmul.f32 0.6931472, %v240_v41  ;;  %v140_v41 = vld [vmem:[#allocation7 + $0x2] sm:$0x3] }
  0x46   :  { %v244_v47 = vpop.eup %243  ;;  %v96_v48 = vmul.f32 0.6931472, %v242_v44 }
  0x47   :  { %v246_v49 = vpop.eup %245  ;;  %v93_v50 = vsel %vm92_vm1, %v90_v40, %v87_v46  ;;  %v107_v51 = vmul.f32 %v244_v47, %v77_v28 }
  0x48   :  { %v102_v52 = vsel %vm101_vm2, %v99_v43, %v96_v48  ;;  %v103_v53 = vadd.f32 %v93_v50, %v83_v42  ;;  %v108_v54 = vmul.f32 %v246_v49, %v78_v29 }
  0x49   :  { %v104_v55 = vadd.f32 %v102_v52, %v84_v45  ;;  %v109_v56 = vsub.f32 2.0, %v107_v51 }
  0x4a   :  { %v120_v57 = vrot.slane %v103_v53, 4  ;;  %v110_v58 = vsub.f32 2.0, %v108_v54 }
  0x4b   :  { %v126_v59 = vrot.slane %v104_v55, 4  ;;  %v111_v60 = vmul.f32 %v244_v47, %v109_v56 }
  0x4c   :  { %v121_v61 = vadd.f32 %v120_v57, %v103_v53  ;;  %v112_v62 = vmul.f32 %v246_v49, %v110_v58 }
  0x4d   :  { %v127_v63 = vadd.f32 %v126_v59, %v104_v55  ;;  %v115_v0 = vmul.f32 %v236_v25, %v111_v60 }
  0x4e   :  { %v122_v3 = vrot.slane %v121_v61, 2  ;;  %v116_v4 = vmul.f32 %v238_v27, %v112_v62 }
  0x4f   :  { %v128_v7 = vrot.slane %v127_v63, 2  ;;  %v117_v8 = vsel %vm113_vm3, %v111_v60, %v115_v0 }
  0x50   :  { %v123_v9 = vadd.f32 %v122_v3, %v121_v61  ;;  %v118_v10 = vsel %vm114_vm4, %v112_v62, %v116_v4  ;;  %v141_v11 = vmul.f32 %v117_v8, %v372_v5  ;;  %v163_v12 = vrot.slane %v117_v8, 4 }
  0x51   :  { %v129_v13 = vadd.f32 %v128_v7, %v127_v63  ;;  %v142_v14 = vmul.f32 %v118_v10, %v374_v6  ;;  %v169_v15 = vrot.slane %v118_v10, 4 }
  0x52   :  { %v124_v16 = vrot.slane %v123_v9, 1  ;;  %v143_v17 = vrot.slane %v141_v11, 4  ;;  %v164_v1 = vadd.f32 %v163_v12, %v117_v8 }
  0x53   :  { %v130_v18 = vrot.slane %v129_v13, 1  ;;  %v149_v19 = vrot.slane %v142_v14, 4  ;;  %v170_v2 = vadd.f32 %v169_v15, %v118_v10 }
  0x54   :  { %v125_v20 = vadd.f32 %v124_v16, %v123_v9  ;;  %v144_v21 = vadd.f32 %v143_v17, %v141_v11  ;;  %v165_v22 = vrot.slane %v164_v1, 2 }
  0x55   :  { %v131_v24 = vadd.f32 %v130_v18, %v129_v13  ;;  %v150_v25 = vadd.f32 %v149_v19, %v142_v14  ;;  %v171_v26 = vrot.slane %v170_v2, 2 }
  0x56   :  { %v145_v27 = vrot.slane %v144_v21, 2  ;;  %v166_v5 = vadd.f32 %v165_v22, %v164_v1 }
  0x57   :  { %v135_v28 = vsel %vm134_vm0, %v131_v24, %v125_v20  ;;  %v151_v29 = vrot.slane %v150_v25, 2  ;;  %v172_v6 = vadd.f32 %v171_v26, %v170_v2 }
  0x58   :  { %v137_v30 = vadd.f32 %v135_v28, %v119_v23  ;;  %v146_v31 = vadd.f32 %v145_v27, %v144_v21  ;;  %v167_v32 = vrot.slane %v166_v5, 1 }
  0x59   :  { %v152_v33 = vadd.f32 %v151_v29, %v150_v25  ;;  %v173_v34 = vrot.slane %v172_v6, 1 }
  0x5a   :  { %138 = vst [vmem:[#allocation7] sm:$0x3] %v137_v30  ;;  %v147_v35 = vrot.slane %v146_v31, 1  ;;  %v168_v36 = vadd.f32 %v167_v32, %v166_v5 }
  0x5b   :  { %v153_v37 = vrot.slane %v152_v33, 1  ;;  %v174_v39 = vadd.f32 %v173_v34, %v172_v6 }
  0x5c   :  { %v148_v40 = vadd.f32 %v147_v35, %v146_v31 }
  0x5d   :  { %v154_v42 = vadd.f32 %v153_v37, %v152_v33  ;;  %v177_v43 = vsel %vm134_vm0, %v174_v39, %v168_v36 }
  0x5e   :  { %v179_v44 = vadd.f32 %v177_v43, %v162_v38 }
  0x5f   :  { %v157_v45 = vsel %vm134_vm0, %v154_v42, %v148_v40 }
  0x60   :  { %v159_v46 = vadd.f32 %v157_v45, %v140_v41  ;;  %180 = vst [vmem:[#allocation7 + $0x4] sm:$0x3] %v179_v44 }
  0x62   :  { %160 = vst [vmem:[#allocation7 + $0x2] sm:$0x3] %v159_v46 }
  0x63   :  { %302 = shalt.err (!%p299_p6)
}
  0x64   :  { %s303_s10 = scalar_lea.hbm %s408_s2, 128 }
  0x65   :  { %p304_p7 = scmp.ne.s32.totalorder %s408_s2, %s303_s10  ;;  %p307_p8 = scmp.lt.u32.totalorder %s303_s10, %s408_s2 }
  0x67   :  { %p309_p9 = pnand %p307_p8, %p304_p7 }
  0x69   :  { %312 = shalt.err (!%p309_p9)
}
  0x6a   :  { %s325_s15 = smov 32   ;;  %s326_s16 = smov 2  }
  0x6b   :  { %216 = dma.vmem_to_hbm [thread:$0]  %s211_s6, 128, %s408_s2, [#allocation4], %s325_s15, %s325_s15, %s326_s16  }
  0x6c   :  { %317 = dma.done.wait [#allocation4], 128  }
  0x6d   :  { %318 = vsyncadd [#allocation4], 4294967168 }
  0x6e   :  { %220 = vsyncpa [#allocation3], 1 }
  0x6f   :  { %221 = vsyncpa [#allocation6], 1 }
  0x70   :  { %222 = vsyncpa [#allocation4], 1 }

</bundles_post_ra>
